<compile_context>
chip_gen: v7x
topology: tpu7x:2x2x1
jax: 0.10.0
libtpu: 0.0.40
codegen_flags: <defaults>
</compile_context>

<pallas_src>
import math

import jax
import jax.numpy as jnp
from jax.experimental import pallas as pl
from jax.experimental.pallas import tpu as pltpu

_INV_SQRT2 = 1.0 / math.sqrt(2.0)


def _round_up(v, mult):
    return (v + mult - 1) // mult * mult


def _erf(z):
    """erf via Abramowitz & Stegun 7.1.26 (max abs err 1.5e-7).

    Uses only ops with guaranteed Mosaic lowering (mul/add/div/exp/where/abs)
    so the kernel never depends on a native erf lowering.
    """
    a1, a2, a3, a4, a5 = (0.254829592, -0.284496736, 1.421413741,
                          -1.453152027, 1.061405429)
    p = 0.3275911
    az = jnp.abs(z)
    t = 1.0 / (1.0 + p * az)
    poly = ((((a5 * t + a4) * t + a3) * t + a2) * t + a1) * t
    e = 1.0 - poly * jnp.exp(-az * az)
    return jnp.where(z >= 0.0, e, -e)


def _gelu_exact(h):
    # torch.nn.GELU() default (approximate='none'):  0.5*x*(1+erf(x/sqrt(2)))
    return 0.5 * h * (1.0 + _erf(h * _INV_SQRT2))


def _make_mlp_kernel(resident, n_j):
    """Builds the fused uproj -> GELU -> dproj kernel body.

    resident: weights are full VMEM-resident 3-D arrays indexed by j inside
              the kernel (DMA'd once per call, constant block index);
              otherwise (tn)-sized weight tiles are streamed by the pipeline.
    n_j     : number of intermediate tiles (static).
    """

    def kernel(x_ref, wu_ref, bu_ref, wd_ref, bd_ref, o_ref, acc_ref):
        j = pl.program_id(1)
        if resident:
            wu = wu_ref[j]      # (d_pad, tn)
            bu = bu_ref[j]      # (1, tn)
            wd = wd_ref[j]      # (tn, d_pad)
        else:
            wu = wu_ref[...]
            bu = bu_ref[...]
            wd = wd_ref[...]

        # Up-projection on the MXU (native dtype in, f32 accumulate), bias,
        # exact-erf GELU on the small (tm, tn) tile.
        h = jnp.dot(x_ref[...], wu, preferred_element_type=jnp.float32)
        h = _gelu_exact(h + bu.astype(jnp.float32))

        # Partial down-projection for this intermediate tile.  (For bf16
        # weights the activations are intentionally fed to the MXU in bf16.)
        partial = jnp.dot(h.astype(wd.dtype), wd,
                          preferred_element_type=jnp.float32)

        if n_j == 1:
            o_ref[...] = (partial + bd_ref[...].astype(jnp.float32)
                          ).astype(o_ref.dtype)
        else:
            @pl.when(j == 0)
            def _():
                acc_ref[...] = partial                      # no zero-init RMW

            @pl.when(jnp.logical_and(j > 0, j < n_j - 1))
            def _():
                acc_ref[...] += partial

            @pl.when(j == n_j - 1)                          # fuse last partial
            def _():
                o_ref[...] = (acc_ref[...] + partial
                              + bd_ref[...].astype(jnp.float32)
                              ).astype(o_ref.dtype)

    return kernel


def morpho_mlp(x, w_up, b_up, w_down, b_down, *, tm=None, tn=None,
               resident=None):
    """Fused MorphoMLP forward: gelu(x @ w_up + b_up) @ w_down + b_down.

    x: (..., d_model); w_up: (d_model, inter); w_down: (inter, d_model).
    """
    d_model = x.shape[-1]
    inter = w_up.shape[-1]
    assert w_up.shape == (d_model, inter)
    assert b_up.shape == (inter,)
    assert w_down.shape == (inter, d_model)
    assert b_down.shape == (d_model,)

    lead_shape = x.shape[:-1]
    x2d = x.reshape(-1, d_model)
    m = x2d.shape[0]

    # ---- generation-aware VMEM budget (v5e/v6e: 128 MiB, v7x: 64 MiB) ------
    try:
        vmem_cap = int(getattr(pltpu.get_tpu_info(), "vmem_capacity_bytes",
                               128 << 20))
    except Exception:  # off-device tracing / older runtimes
        vmem_cap = 128 << 20
    vmem_ceiling = min((vmem_cap * 3) // 4, 100 << 20)

    # ---- pad d_model to a lane-aligned multiple of 128 (exact padding) -----
    d_pad = _round_up(max(d_model, 128), 128)
    if d_pad != d_model:
        x2d = jnp.pad(x2d, ((0, 0), (0, d_pad - d_model)))
        w_up = jnp.pad(w_up, ((0, d_pad - d_model), (0, 0)))
        w_down = jnp.pad(w_down, ((0, 0), (0, d_pad - d_model)))
        b_down = jnp.pad(b_down, (0, d_pad - d_model))

    # ---- pad the intermediate dim to a multiple of the tile (exact:
    #      gelu(0) = 0 and the padded w_down rows are zero) ------------------
    inter_128 = _round_up(inter, 128)
    tn_eff = _round_up(min(tn if tn is not None else 512, inter_128), 128)
    inter_p = _round_up(inter_128, tn_eff)
    if inter_p != inter:
        w_up = jnp.pad(w_up, ((0, 0), (0, inter_p - inter)))
        b_up = jnp.pad(b_up, (0, inter_p - inter))
        w_down = jnp.pad(w_down, ((0, inter_p - inter), (0, 0)))

    isz_x = jnp.dtype(x2d.dtype).itemsize
    isz_wu = jnp.dtype(w_up.dtype).itemsize
    isz_wd = jnp.dtype(w_down.dtype).itemsize
    isz_b = jnp.dtype(b_up.dtype).itemsize
    weight_bytes = d_pad * inter_p * isz_wu + inter_p * d_pad * isz_wd

    # ---- resident-vs-streamed weights --------------------------------------
    if resident is None:
        # 2x accounting (the pipeliner may still double-buffer constant-index
        # blocks) and keep at most half the ceiling for weights.
        resident = 2 * weight_bytes <= vmem_ceiling // 2

    # ---- row tiling ---------------------------------------------------------
    m_pad = _round_up(max(m, 8), 8)
    if tm is None:
        # Streamed weights are re-fetched once per row tile -> use large row
        # tiles to amortize (HBM-bound below ~640-1024 rows on v6e/v7x).
        # Resident weights only need an MXU-friendly tile.
        tm_target = 512 if resident else (640 if vmem_cap <= (64 << 20)
                                          else 1024)
    else:
        tm_target = tm
    tm_eff = max(8, min(_round_up(tm_target, 8), m_pad))
    # Guarantee >= 2 row tiles for reasonably sized inputs so the "parallel"
    # row axis can actually split across v7x's two TensorCores.
    if m_pad >= 512 and tm_eff >= m_pad:
        tm_eff = _round_up((m_pad + 1) // 2, 8)
    m_pad = _round_up(m_pad, tm_eff)
    if m_pad != m:
        x2d = jnp.pad(x2d, ((0, m_pad - m), (0, 0)))

    # ---- shrink tiles until the (conservative) VMEM need fits the budget ---
    def _vmem_need(tm_, tn_, res_):
        need = tm_ * d_pad * 4                              # f32 accumulator
        need += 2 * tm_ * d_pad * isz_x                     # x tiles (dbl-buf)
        need += 2 * tm_ * d_pad * isz_x                     # out tiles
        need += 2 * d_pad * isz_b                           # b_down
        if res_:
            need += 2 * (weight_bytes + inter_p * isz_b)    # resident weights
        else:
            need += 2 * (d_pad * tn_ * isz_wu + tn_ * d_pad * isz_wd
                         + tn_ * isz_b)                     # streamed tiles
        return need

    while _vmem_need(tm_eff, tn_eff, resident) > vmem_ceiling:
        if resident:
            resident = False
        elif (tn_eff > 128 and tn_eff % 256 == 0
              and inter_p % (tn_eff // 2) == 0):
            tn_eff //= 2
        elif tm_eff > 256 and tm_eff % 16 == 0:
            tm_eff //= 2
        else:
            break

    n_i = m_pad // tm_eff
    n_j = inter_p // tn_eff
    vmem_need = _vmem_need(tm_eff, tn_eff, resident)
    vmem_limit = int(min(max(int(1.2 * vmem_need) + (2 << 20), 32 << 20),
                         vmem_ceiling))

    # ---- cost estimate (weights are re-streamed once per row tile unless
    #      resident) ----------------------------------------------------------
    weight_stream_factor = 1 if resident else n_i
    cost = pl.CostEstimate(
        flops=4 * m_pad * d_pad * inter_p,                  # two matmuls
        transcendentals=m_pad * inter_p,                    # exp inside erf
        bytes_accessed=int(2 * m_pad * d_pad * isz_x
                           + weight_stream_factor * weight_bytes
                           + inter_p * isz_b + d_pad * isz_b),
    )

    # ---- weight operands / BlockSpecs ---------------------------------------
    bd2d = b_down.reshape(1, d_pad)
    if resident:
        # Pre-tile the intermediate axis into a leading dim so the kernel can
        # index tiles dynamically (ref[j]) without lane-dim dynamic slices;
        # constant index_maps => weights are DMA'd into VMEM once per call.
        wu_op = w_up.reshape(d_pad, n_j, tn_eff).transpose(1, 0, 2)
        bu_op = b_up.reshape(n_j, 1, tn_eff)
        wd_op = w_down.reshape(n_j, tn_eff, d_pad)
        wu_spec = pl.BlockSpec((n_j, d_pad, tn_eff), lambda i, j: (0, 0, 0))
        bu_spec = pl.BlockSpec((n_j, 1, tn_eff), lambda i, j: (0, 0, 0))
        wd_spec = pl.BlockSpec((n_j, tn_eff, d_pad), lambda i, j: (0, 0, 0))
    else:
        wu_op = w_up
        bu_op = b_up.reshape(1, inter_p)
        wd_op = w_down
        wu_spec = pl.BlockSpec((d_pad, tn_eff), lambda i, j: (0, j))
        bu_spec = pl.BlockSpec((1, tn_eff), lambda i, j: (0, j))
        wd_spec = pl.BlockSpec((tn_eff, d_pad), lambda i, j: (j, 0))

    out = pl.pallas_call(
        _make_mlp_kernel(resident, n_j),
        out_shape=jax.ShapeDtypeStruct((m_pad, d_pad), x.dtype),
        grid_spec=pltpu.PrefetchScalarGridSpec(
            num_scalar_prefetch=0,
            grid=(n_i, n_j),
            in_specs=[
                pl.BlockSpec((tm_eff, d_pad), lambda i, j: (i, 0)),
                wu_spec, bu_spec, wd_spec,
                pl.BlockSpec((1, d_pad), lambda i, j: (0, 0)),
            ],
            out_specs=pl.BlockSpec((tm_eff, d_pad), lambda i, j: (i, 0)),
            scratch_shapes=[pltpu.VMEM((tm_eff, d_pad), jnp.float32)],
        ),
        compiler_params=pltpu.CompilerParams(
            dimension_semantics=("parallel", "arbitrary"),
            vmem_limit_bytes=vmem_limit,
        ),
        cost_estimate=cost,
    )(x2d, wu_op, bu_op, wd_op, bd2d)

    return out[:m, :d_model].reshape(*lead_shape, d_model)


def init_params(key, d_model):
    """Deterministic synthetic params matching nn.Linear shapes.

    PyTorch stores uproj.weight as (4*d_model, d_model); we keep the transposed
    layout (d_model, 4*d_model) so the kernel does x @ W directly.
    """
    inter = 4 * d_model
    k1, k2, k3, k4 = jax.random.split(key, 4)
    bound_u = 1.0 / math.sqrt(d_model)
    bound_d = 1.0 / math.sqrt(inter)
    w_up = jax.random.uniform(k1, (d_model, inter), jnp.float32, -bound_u, bound_u)
    b_up = jax.random.uniform(k2, (inter,), jnp.float32, -bound_u, bound_u)
    w_down = jax.random.uniform(k3, (inter, d_model), jnp.float32, -bound_d, bound_d)
    b_down = jax.random.uniform(k4, (d_model,), jnp.float32, -bound_d, bound_d)
    return w_up, b_up, w_down, b_down


def _reference(x, w_up, b_up, w_down, b_down):
    x = x.astype(jnp.float32)
    h = x @ w_up.astype(jnp.float32) + b_up.astype(jnp.float32)
    h = 0.5 * h * (1.0 + jax.lax.erf(h * _INV_SQRT2))
    return h @ w_down.astype(jnp.float32) + b_down.astype(jnp.float32)


if __name__ == "__main__":
    key = jax.random.PRNGKey(0)
    keys = jax.random.split(key, 8)

    # 1) module-sized toy shape: resident weights, single intermediate tile.
    d1 = 32
    x1 = jax.random.normal(keys[0], (2, 8, d1), jnp.float32)
    p1 = init_params(keys[1], d1)
    y1 = jax.block_until_ready(morpho_mlp(x1, *p1))
    assert y1.shape == (2, 8, d1)
    assert jnp.allclose(y1, _reference(x1, *p1), atol=2e-2, rtol=2e-2)

    # 2) non-divisible row count + multi intermediate tiles (resident path,
    #    in-kernel accumulation over j).
    d2 = 64
    x2 = jax.random.normal(keys[2], (3, 5, d2), jnp.float32)
    p2 = init_params(keys[3], d2)
    y2 = jax.block_until_ready(morpho_mlp(x2, *p2, tm=8, tn=128))
    assert y2.shape == (3, 5, d2)
    assert jnp.allclose(y2, _reference(x2, *p2), atol=2e-2, rtol=2e-2)

    # 3) streamed-weight path (forced), multiple row and intermediate tiles.
    d3 = 128
    x3 = jax.random.normal(keys[4], (2, 12, d3), jnp.float32)
    p3 = init_params(keys[5], d3)
    y3 = jax.block_until_ready(
        morpho_mlp(x3, *p3, tm=16, tn=128, resident=False))
    assert y3.shape == (2, 12, d3)
    assert jnp.allclose(y3, _reference(x3, *p3), atol=2e-2, rtol=2e-2)

    # 4) bf16 activations + weights on the default (auto) path.
    d4 = 128
    x4 = jax.random.normal(keys[6], (4, 64, d4), jnp.float32).astype(jnp.bfloat16)
    p4 = tuple(p.astype(jnp.bfloat16) for p in init_params(keys[7], d4))
    y4 = jax.block_until_ready(morpho_mlp(x4, *p4))
    y4_ref = _reference(x4, *p4)
    assert y4.shape == (4, 64, d4)
    assert jnp.allclose(y4.astype(jnp.float32), y4_ref, atol=1e-1, rtol=1e-1)

    print("KERNEL_OK")
</pallas_src>

<mosaic_0001>
module attributes {stable_mosaic.version = 11 : i64} {
  func.func @kernel(%arg0: i32, %arg1: i32, %arg2: memref<16x128xf32, #tpu.memory_space<vmem>>, %arg3: memref<1x128x128xf32, #tpu.memory_space<vmem>>, %arg4: memref<1x1x128xf32, #tpu.memory_space<vmem>>, %arg5: memref<1x128x128xf32, #tpu.memory_space<vmem>>, %arg6: memref<1x128xf32, #tpu.memory_space<vmem>>, %arg7: memref<16x128xf32, #tpu.memory_space<vmem>>, %arg8: memref<16x128xf32, #tpu.memory_space<vmem>>) attributes {dimension_semantics = [#tpu.dimension_semantics<parallel>, #tpu.dimension_semantics<arbitrary>], iteration_bounds = array<i64: 1, 1>, scalar_prefetch = 0 : i64, scratch_operands = 1 : i64, tpu.core_type = #tpu.core_type<tc>, window_params = [{transform_indices = @transform_0, window_bounds = array<i64: 16, 128>}, {pipeline_mode = #tpu.pipeline_mode<synchronous>, transform_indices = @transform_1, window_bounds = array<i64: 1, 128, 128>}, {pipeline_mode = #tpu.pipeline_mode<synchronous>, transform_indices = @transform_2, window_bounds = array<i64: 1, 1, 128>}, {pipeline_mode = #tpu.pipeline_mode<synchronous>, transform_indices = @transform_3, window_bounds = array<i64: 1, 128, 128>}, {pipeline_mode = #tpu.pipeline_mode<synchronous>, transform_indices = @transform_4, window_bounds = array<i64: 1, 128>}, {transform_indices = @transform_5, window_bounds = array<i64: 16, 128>}]} {
    %0 = arith.index_cast %arg1 : i32 to index
    %c0 = arith.constant 0 : index
    %c0_0 = arith.constant 0 : index
    %1 = vector.load %arg3[%0, %c0, %c0_0] : memref<1x128x128xf32, #tpu.memory_space<vmem>>, vector<1x128x128xf32>
    %2 = vector.shape_cast %1 : vector<1x128x128xf32> to vector<128x128xf32>
    %3 = arith.index_cast %arg1 : i32 to index
    %c0_1 = arith.constant 0 : index
    %c0_2 = arith.constant 0 : index
    %4 = vector.load %arg4[%3, %c0_1, %c0_2] : memref<1x1x128xf32, #tpu.memory_space<vmem>>, vector<1x1x128xf32>
    %5 = vector.shape_cast %4 : vector<1x1x128xf32> to vector<1x128xf32>
    %6 = arith.index_cast %arg1 : i32 to index
    %c0_3 = arith.constant 0 : index
    %c0_4 = arith.constant 0 : index
    %7 = vector.load %arg5[%6, %c0_3, %c0_4] : memref<1x128x128xf32, #tpu.memory_space<vmem>>, vector<1x128x128xf32>
    %8 = vector.shape_cast %7 : vector<1x128x128xf32> to vector<128x128xf32>
    %c0_5 = arith.constant 0 : index
    %c0_6 = arith.constant 0 : index
    %9 = vector.load %arg2[%c0_5, %c0_6] : memref<16x128xf32, #tpu.memory_space<vmem>>, vector<16x128xf32>
    %cst = arith.constant dense<0.000000e+00> : vector<16x128xf32>
    %10 = tpu.matmul %9, %2, %cst {dimension_numbers = #tpu.dot_dimension_numbers<[1], [0], [0], [1], [0, 0, 1, 1], [], []>} : vector<16x128xf32>, vector<128x128xf32>, vector<16x128xf32> -> vector<16x128xf32>
    %11 = vector.broadcast %5 : vector<1x128xf32> to vector<16x128xf32>
    %12 = arith.addf %10, %11 : vector<16x128xf32>
    %cst_7 = arith.constant 5.000000e-01 : f32
    %13 = vector.broadcast %cst_7 : f32 to vector<16x128xf32>
    %14 = arith.mulf %13, %12 : vector<16x128xf32>
    %cst_8 = arith.constant 0.707106769 : f32
    %15 = vector.broadcast %cst_8 : f32 to vector<16x128xf32>
    %16 = arith.mulf %12, %15 : vector<16x128xf32>
    %17 = math.absf %16 : vector<16x128xf32>
    %cst_9 = arith.constant 0.327591091 : f32
    %18 = vector.broadcast %cst_9 : f32 to vector<16x128xf32>
    %19 = arith.mulf %18, %17 : vector<16x128xf32>
    %cst_10 = arith.constant 1.000000e+00 : f32
    %20 = vector.broadcast %cst_10 : f32 to vector<16x128xf32>
    %21 = arith.addf %20, %19 : vector<16x128xf32>
    %cst_11 = arith.constant 1.000000e+00 : f32
    %22 = vector.broadcast %cst_11 : f32 to vector<16x128xf32>
    %23 = arith.divf %22, %21 : vector<16x128xf32>
    %cst_12 = arith.constant 1.06140542 : f32
    %24 = vector.broadcast %cst_12 : f32 to vector<16x128xf32>
    %25 = arith.mulf %24, %23 : vector<16x128xf32>
    %cst_13 = arith.constant -1.45315206 : f32
    %26 = vector.broadcast %cst_13 : f32 to vector<16x128xf32>
    %27 = arith.addf %25, %26 : vector<16x128xf32>
    %28 = arith.mulf %27, %23 : vector<16x128xf32>
    %cst_14 = arith.constant 1.42141378 : f32
    %29 = vector.broadcast %cst_14 : f32 to vector<16x128xf32>
    %30 = arith.addf %28, %29 : vector<16x128xf32>
    %31 = arith.mulf %30, %23 : vector<16x128xf32>
    %cst_15 = arith.constant -0.284496725 : f32
    %32 = vector.broadcast %cst_15 : f32 to vector<16x128xf32>
    %33 = arith.addf %31, %32 : vector<16x128xf32>
    %34 = arith.mulf %33, %23 : vector<16x128xf32>
    %cst_16 = arith.constant 0.254829586 : f32
    %35 = vector.broadcast %cst_16 : f32 to vector<16x128xf32>
    %36 = arith.addf %34, %35 : vector<16x128xf32>
    %37 = arith.mulf %36, %23 : vector<16x128xf32>
    %cst_17 = arith.constant 0.000000e+00 : f32
    %38 = vector.broadcast %cst_17 : f32 to vector<16x128xf32>
    %39 = arith.subf %38, %17 : vector<16x128xf32>
    %40 = arith.mulf %39, %17 : vector<16x128xf32>
    %41 = math.exp %40 : vector<16x128xf32>
    %42 = arith.mulf %37, %41 : vector<16x128xf32>
    %cst_18 = arith.constant 1.000000e+00 : f32
    %43 = vector.broadcast %cst_18 : f32 to vector<16x128xf32>
    %44 = arith.subf %43, %42 : vector<16x128xf32>
    %cst_19 = arith.constant 0.000000e+00 : f32
    %45 = vector.broadcast %cst_19 : f32 to vector<16x128xf32>
    %46 = arith.cmpf oge, %16, %45 : vector<16x128xf32>
    %cst_20 = arith.constant 0.000000e+00 : f32
    %47 = vector.broadcast %cst_20 : f32 to vector<16x128xf32>
    %48 = arith.subf %47, %44 : vector<16x128xf32>
    %49 = arith.select %46, %44, %48 : vector<16x128xi1>, vector<16x128xf32>
    %cst_21 = arith.constant 1.000000e+00 : f32
    %50 = vector.broadcast %cst_21 : f32 to vector<16x128xf32>
    %51 = arith.addf %50, %49 : vector<16x128xf32>
    %52 = arith.mulf %14, %51 : vector<16x128xf32>
    %cst_22 = arith.constant dense<0.000000e+00> : vector<16x128xf32>
    %53 = tpu.matmul %52, %8, %cst_22 {dimension_numbers = #tpu.dot_dimension_numbers<[1], [0], [0], [1], [0, 0, 1, 1], [], []>} : vector<16x128xf32>, vector<128x128xf32>, vector<16x128xf32> -> vector<16x128xf32>
    %c0_23 = arith.constant 0 : index
    %c0_24 = arith.constant 0 : index
    %54 = vector.load %arg6[%c0_23, %c0_24] : memref<1x128xf32, #tpu.memory_space<vmem>>, vector<1x128xf32>
    %55 = vector.broadcast %54 : vector<1x128xf32> to vector<16x128xf32>
    %56 = arith.addf %53, %55 : vector<16x128xf32>
    %c0_25 = arith.constant 0 : index
    %c0_26 = arith.constant 0 : index
    %57 = vector.load %arg7[%c0_25, %c0_26] : memref<16x128xf32, #tpu.memory_space<vmem>>, vector<16x128xf32>
    tpu.vector_store %arg7[%c0_25, %c0_26], %56 {strides = array<i32>} : memref<16x128xf32, #tpu.memory_space<vmem>>, vector<16x128xf32>,
    return
  }
  func.func @transform_0(%arg0: i32, %arg1: i32) -> (i32, i32) {
    %c0_i32 = arith.constant 0 : i32
    %c0_i32_0 = arith.constant 0 : i32
    return %arg0, %c0_i32 : i32, i32
  }
  func.func @transform_1(%arg0: i32, %arg1: i32) -> (i32, i32, i32) {
    %c0_i32 = arith.constant 0 : i32
    %c0_i32_0 = arith.constant 0 : i32
    %c0_i32_1 = arith.constant 0 : i32
    %c0_i32_2 = arith.constant 0 : i32
    return %c0_i32, %c0_i32_0, %c0_i32_1 : i32, i32, i32
  }
  func.func @transform_2(%arg0: i32, %arg1: i32) -> (i32, i32, i32) {
    %c0_i32 = arith.constant 0 : i32
    %c0_i32_0 = arith.constant 0 : i32
    %c0_i32_1 = arith.constant 0 : i32
    %c0_i32_2 = arith.constant 0 : i32
    return %c0_i32, %c0_i32_0, %c0_i32_1 : i32, i32, i32
  }
  func.func @transform_3(%arg0: i32, %arg1: i32) -> (i32, i32, i32) {
    %c0_i32 = arith.constant 0 : i32
    %c0_i32_0 = arith.constant 0 : i32
    %c0_i32_1 = arith.constant 0 : i32
    %c0_i32_2 = arith.constant 0 : i32
    return %c0_i32, %c0_i32_0, %c0_i32_1 : i32, i32, i32
  }
  func.func @transform_4(%arg0: i32, %arg1: i32) -> (i32, i32) {
    %c0_i32 = arith.constant 0 : i32
    %c0_i32_0 = arith.constant 0 : i32
    %c0_i32_1 = arith.constant 0 : i32
    return %c0_i32, %c0_i32_0 : i32, i32
  }
  func.func @transform_5(%arg0: i32, %arg1: i32) -> (i32, i32) {
    %c0_i32 = arith.constant 0 : i32
    %c0_i32_0 = arith.constant 0 : i32
    return %arg0, %c0_i32 : i32, i32
  }
}

</mosaic_0001>

<bundles_post_ra>
// kernel: tpu_custom_call.1
= control target key start
LH: loop header
LB: loop body
LE: loop exit
PB: predicated region body
PF: predicated region fallthrough
CT: control target
= control target key end

     0   :  { %10 = vsyncpa [#allocation4], 0  ;;  %s726_s0 = inlined_call_operand.hbm [shape: f32[16,128], index: 0, kind: input, shape index: {}]   ;;  %s727_s1 = inlined_call_operand.hbm [shape: f32[1,128,128], index: 1, kind: input, shape index: {}]   ;;  %s728_s2 = inlined_call_operand.vmem [shape: f32[1,1,128], index: 2, kind: input, shape index: {}]   ;;  %s729_s3 = inlined_call_operand.hbm [shape: f32[1,128,128], index: 3, kind: input, shape index: {}]   ;;  %s730_s4 = inlined_call_operand.vmem [shape: f32[1,128], index: 4, kind: input, shape index: {}]   ;;  %s731_s5 = inlined_call_operand.hbm [shape: f32[16,128], index: 5, kind: output, shape index: {}]  }
   0x1   :  { %11 = vsyncpa [#allocation7], 0 }
   0x2   :  { %12 = vsyncpa [#allocation5], 0  ;;  %s617_s18 = smov [#allocation6]   ;;  %s618_s20 = smov [#allocation3]  }
   0x3   :  { %s30_s19 = sshll.u32 %s617_s18, 4  ;;  %s18_s21 = sshll.u32 %s618_s20, 4  ;;  %s31_s19 = int_to_ptr.vmem [resolvable:$true] %s30_s19  ;;  %s653_s21 = int_to_ptr.vmem [resolvable:$true] %s18_s21 }
   0x4   :  { %s523_s24 = scalar_lea.hbm %s727_s1, 2048 }
   0x5   :  { %p524_p0 = scmp.ne.s32.totalorder %s727_s1, %s523_s24  ;;  %p527_p1 = scmp.lt.u32.totalorder %s523_s24, %s727_s1 }
   0x7   :  { %p529_p2 = pnand %p527_p1, %p524_p0 }
   0x9   :  { %532 = shalt.err (!%p529_p2)
}
   0xa   :  { %s533_s29 = scalar_lea.vmem %s31_s19, 2048  ;;  %p538_p4 = scmp.lt.s32.totalorder %s31_s19, %s31_s19 }
   0xb   :  { %p534_p3 = scmp.ne.s32.totalorder %s31_s19, %s533_s29  ;;  %p539_p5 = scmp.lt.s32.totalorder %s533_s29, %s533_s29 }
   0xd   :  { %p540_p6 = por %p539_p5, %p538_p4 }
   0xf   :  { %p541_p7 = pnand %p540_p6, %p534_p3 }
  0x11   :  { %544 = shalt.err (!%p541_p7)
}
  0x12   :  { %s619_s30 = smov 128   ;;  %s620_s6 = smov 8  }
  0x13   :  { %36 = dma.hbm_to_vmem [thread:$0]  %s727_s1, 2048, %s31_s19, [#allocation7], %s619_s30, %s619_s30, %s620_s6  }
  0x14   :  { %s545_s11 = scalar_lea.hbm %s726_s0, 256 }
  0x15   :  { %p546_p8 = scmp.ne.s32.totalorder %s726_s0, %s545_s11  ;;  %p549_p9 = scmp.lt.u32.totalorder %s545_s11, %s726_s0 }
  0x17   :  { %p551_p10 = pnand %p549_p9, %p546_p8 }
  0x19   :  { %554 = shalt.err (!%p551_p10)
}
  0x1a   :  { %s555_s16 = scalar_lea.vmem %s653_s21, 256  ;;  %p560_p12 = scmp.lt.s32.totalorder %s653_s21, %s653_s21 }
  0x1b   :  { %p556_p11 = scmp.ne.s32.totalorder %s653_s21, %s555_s16  ;;  %p561_p13 = scmp.lt.s32.totalorder %s555_s16, %s555_s16 }
  0x1d   :  { %p562_p0 = por %p561_p13, %p560_p12 }
  0x1f   :  { %p563_p1 = pnand %p562_p0, %p556_p11 }
  0x21   :  { %566 = shalt.err (!%p563_p1)
}
  0x22   :  { %24 = dma.hbm_to_vmem [thread:$0]  %s726_s0, 256, %s653_s21, [#allocation4], %s619_s30, %s619_s30, %s620_s6  }
  0x23   :  { %s621_s18 = smov [#allocation8]   ;;  %s567_s23 = scalar_lea.hbm %s729_s3, 2048 }
  0x24   :  { %s44_s19 = sshll.u32 %s621_s18, 4  ;;  %p568_p2 = scmp.ne.s32.totalorder %s729_s3, %s567_s23  ;;  %s45_s19 = int_to_ptr.vmem [resolvable:$true] %s44_s19 }
  0x25   :  { %p571_p3 = scmp.lt.u32.totalorder %s567_s23, %s729_s3 }
  0x27   :  { %p573_p4 = pnand %p571_p3, %p568_p2 }
  0x29   :  { %576 = shalt.err (!%p573_p4)
}
  0x2a   :  { %s577_s28 = scalar_lea.vmem %s45_s19, 2048  ;;  %p582_p6 = scmp.lt.s32.totalorder %s45_s19, %s45_s19 }
  0x2b   :  { %p578_p5 = scmp.ne.s32.totalorder %s45_s19, %s577_s28  ;;  %p583_p7 = scmp.lt.s32.totalorder %s577_s28, %s577_s28 }
  0x2d   :  { %p584_p8 = por %p583_p7, %p582_p6 }
  0x2f   :  { %p585_p9 = pnand %p584_p8, %p578_p5 }
  0x31   :  { %588 = shalt.err (!%p585_p9)
}
  0x32   :  { %50 = dma.hbm_to_vmem [thread:$0]  %s729_s3, 2048, %s45_s19, [#allocation7], %s619_s30, %s619_s30, %s620_s6  }
  0x33   :  { %611 = dma.done.wait [#allocation4], 256  }
  0x34   :  { %612 = vsyncadd [#allocation4], 4294967040 }
  0x35   :  { %613 = dma.done.wait [#allocation7], 4096  }
  0x36   :  { %614 = vsyncadd [#allocation7], 4294963200  ;;  %v64_v0 = vld [vmem:[#allocation6] sm:$0xff]  ;;  %v65_v1 = vld [vmem:[#allocation6 + $0x8] sm:$0xff]  ;;  %s622_s8 = smov [#allocation9]  }
  0x37   :  { %v66_v2 = vld [vmem:[#allocation6 + $0x10] sm:$0xff]  ;;  %v445_v3 = vpack.c.bf16 %v65_v1, %v64_v0  ;;  %v67_v4 = vld [vmem:[#allocation6 + $0x18] sm:$0xff]  ;;  %v68_v6 = vld [vmem:[#allocation6 + $0x20] sm:$0xff]  ;;  %s324_s9 = sshll.u32 %s622_s8, 4  ;;  %s325_s9 = int_to_ptr.vmem [resolvable:$true] %s324_s9 }
  0x38   :  { %v449_v5 = vpack.c.bf16 %v67_v4, %v66_v2  ;;  %v69_v7 = vld [vmem:[#allocation6 + $0x28] sm:$0xff]  ;;  %v98_v9 = vld [vmem:[#allocation3] sm:$0xff]  ;;  %v71_v11 = vld [vmem:[#allocation6 + $0x38] sm:$0xff]  ;;  %s589_s10 = scalar_lea.vmem %s325_s9, 256  ;;  %p594_p11 = scmp.lt.s32.totalorder %s325_s9, %s325_s9 }
  0x39   :  { %446 = vmatprep.subr.bf16.mxu0 %v445_v3  ;;  %v453_v8 = vpack.c.bf16 %v69_v7, %v68_v6  ;;  %v70_v10 = vld [vmem:[#allocation6 + $0x30] sm:$0xff]  ;;  %407 = vmatprep.mubr.f32.mxu0 %v98_v9  ;;  %v72_v13 = vld [vmem:[#allocation6 + $0x40] sm:$0xff]  ;;  %v73_v14 = vld [vmem:[#allocation6 + $0x48] sm:$0xff]  ;;  %p590_p10 = scmp.ne.s32.totalorder %s325_s9, %s589_s10  ;;  %p595_p12 = scmp.lt.s32.totalorder %s589_s10, %s589_s10 }
  0x3a   :  { %448 = vmatpush3.bf16.msra.mxu0 %v445_v3  ;;  %v457_v12 = vpack.c.bf16 %v71_v11, %v70_v10  ;;  %v461_v15 = vpack.c.bf16 %v73_v14, %v72_v13  ;;  %v74_v16 = vld [vmem:[#allocation6 + $0x50] sm:$0xff]  ;;  %v75_v17 = vld [vmem:[#allocation6 + $0x58] sm:$0xff]  ;;  %v76_v19 = vld [vmem:[#allocation6 + $0x60] sm:$0xff] }
  0x3b   :  { %450 = vmatprep.subr.bf16.mxu0 %v449_v5  ;;  %v465_v18 = vpack.c.bf16 %v75_v17, %v74_v16  ;;  %v77_v20 = vld [vmem:[#allocation6 + $0x68] sm:$0xff]  ;;  %v78_v22 = vld [vmem:[#allocation6 + $0x70] sm:$0xff]  ;;  %v79_v23 = vld [vmem:[#allocation6 + $0x78] sm:$0xff]  ;;  %p596_p13 = por %p595_p12, %p594_p11 }
  0x3c   :  { %v469_v21 = vpack.c.bf16 %v77_v20, %v76_v19  ;;  %v473_v24 = vpack.c.bf16 %v79_v23, %v78_v22  ;;  %v99_v25 = vld [vmem:[#allocation3 + $0x8] sm:$0xff]  ;;  %v82_v26 = vld [vmem:[#allocation8] sm:$0xff]  ;;  %v83_v27 = vld [vmem:[#allocation8 + $0x8] sm:$0xff] }
  0x3d   :  { %v84_v28 = vld [vmem:[#allocation8 + $0x10] sm:$0xff]  ;;  %v477_v29 = vpack.c.bf16 %v83_v27, %v82_v26  ;;  %v85_v30 = vld [vmem:[#allocation8 + $0x18] sm:$0xff]  ;;  %v86_v32 = vld [vmem:[#allocation8 + $0x20] sm:$0xff]  ;;  %p597_p0 = pnand %p596_p13, %p590_p10 }
  0x3e   :  { %452 = vmatpush3.bf16.msra.mxu0 %v449_v5  ;;  %v481_v31 = vpack.c.bf16 %v85_v30, %v84_v28  ;;  %v87_v33 = vld [vmem:[#allocation8 + $0x28] sm:$0xff]  ;;  %v88_v35 = vld [vmem:[#allocation8 + $0x30] sm:$0xff]  ;;  %v89_v36 = vld [vmem:[#allocation8 + $0x38] sm:$0xff] }
  0x3f   :  { %454 = vmatprep.subr.bf16.mxu0 %v453_v8  ;;  %478 = vmatprep.subr.bf16.mxu1 %v477_v29  ;;  %v485_v34 = vpack.c.bf16 %v87_v33, %v86_v32  ;;  %v489_v37 = vpack.c.bf16 %v89_v36, %v88_v35  ;;  %v90_v38 = vld [vmem:[#allocation8 + $0x40] sm:$0xff]  ;;  %v91_v39 = vld [vmem:[#allocation8 + $0x48] sm:$0xff]  ;;  %v92_v41 = vld [vmem:[#allocation8 + $0x50] sm:$0xff] }
  0x40   :  { %480 = vmatpush3.bf16.msra.mxu1 %v477_v29  ;;  %v493_v40 = vpack.c.bf16 %v91_v39, %v90_v38  ;;  %v93_v42 = vld [vmem:[#allocation8 + $0x58] sm:$0xff]  ;;  %v94_v44 = vld [vmem:[#allocation8 + $0x60] sm:$0xff]  ;;  %v95_v45 = vld [vmem:[#allocation8 + $0x68] sm:$0xff] }
  0x41   :  { %482 = vmatprep.subr.bf16.mxu1 %v481_v31  ;;  %v497_v43 = vpack.c.bf16 %v93_v42, %v92_v41  ;;  %v501_v46 = vpack.c.bf16 %v95_v45, %v94_v44  ;;  %v96_v47 = vld [vmem:[#allocation8 + $0x70] sm:$0xff]  ;;  %v97_v48 = vld [vmem:[#allocation8 + $0x78] sm:$0xff] }
  0x42   :  { %456 = vmatpush3.bf16.msra.mxu0 %v453_v8  ;;  %v505_v49 = vpack.c.bf16 %v97_v48, %v96_v47  ;;  %v337_v50 = vld [vmem:[%s728_s2] ss:$0 sm:$0xff] }
  0x43   :  { %458 = vmatprep.subr.bf16.mxu0 %v457_v12  ;;  %v338_v41 = vld [vmem:[%s730_s4] ss:$0 sm:$0xff] }
  0x44   :  { %484 = vmatpush3.bf16.msra.mxu1 %v481_v31 }
  0x45   :  { %486 = vmatprep.subr.bf16.mxu1 %v485_v34 }
  0x46   :  { %460 = vmatpush3.bf16.msra.mxu0 %v457_v12 }
  0x47   :  { %462 = vmatprep.subr.bf16.mxu0 %v461_v15 }
  0x48   :  { %488 = vmatpush3.bf16.msra.mxu1 %v485_v34 }
  0x49   :  { %490 = vmatprep.subr.bf16.mxu1 %v489_v37 }
  0x4a   :  { %464 = vmatpush3.bf16.msra.mxu0 %v461_v15 }
  0x4b   :  { %466 = vmatprep.subr.bf16.mxu0 %v465_v18 }
  0x4c   :  { %492 = vmatpush3.bf16.msra.mxu1 %v489_v37 }
  0x4d   :  { %494 = vmatprep.subr.bf16.mxu1 %v493_v40 }
  0x4e   :  { %468 = vmatpush3.bf16.msra.mxu0 %v465_v18 }
  0x4f   :  { %470 = vmatprep.subr.bf16.mxu0 %v469_v21 }
  0x50   :  { %496 = vmatpush3.bf16.msra.mxu1 %v493_v40 }
  0x51   :  { %498 = vmatprep.subr.bf16.mxu1 %v497_v43 }
  0x52   :  { %472 = vmatpush3.bf16.msra.mxu0 %v469_v21 }
  0x53   :  { %474 = vmatprep.subr.bf16.mxu0 %v473_v24 }
  0x54   :  { %500 = vmatpush3.bf16.msra.mxu1 %v497_v43 }
  0x55   :  { %502 = vmatprep.subr.bf16.mxu1 %v501_v46 }
  0x56   :  { %476 = vmatpush3.bf16.msra.mxu0 %v473_v24 }
  0x58   :  { %504 = vmatpush3.bf16.msra.mxu1 %v501_v46 }
  0x59   :  { %408 = vmatmul.mubr.f32.vlgmr.msra.gmra.mrb[0].mxu0 %v99_v25  ;;  %506 = vmatprep.subr.bf16.mxu1 %v505_v49 }
  0x5c   :  { %508 = vmatpush3.bf16.msra.mxu1 %v505_v49 }
 0x12c   :  { %v409_v51 = vpop.f32.mrb[0].mxu0 }
 0x12d   :  { %v178_v52 = vadd.f32 %v409_v51, %v337_v50  ;;  %v172_v53 = vpop.f32.mrb[1].mxu0 }
 0x12e   :  { %v173_v54 = vadd.f32 %v337_v50, %v172_v53 }
 0x12f   :  { %v184_v55 = vmul.f32 0.70710677, %v178_v52  ;;  %v182_v38 = vmul.f32 0.5, %v178_v52 }
 0x130   :  { %v183_v56 = vmul.f32 0.70710677, %v173_v54  ;;  %v181_v36 = vmul.f32 0.5, %v173_v54 }
 0x131   :  { %v186_v57 = vand.u32 2147483647, %v184_v55  ;;  %vm226_vm0 = vcmp.ge.f32.partialorder %v184_v55, 0.0 }
 0x132   :  { %v185_v58 = vand.u32 2147483647, %v183_v56  ;;  %vm225_vm1 = vcmp.ge.f32.partialorder %v183_v56, 0.0 }
 0x133   :  { %v188_v59 = vmul.f32 0.3275911, %v186_v57  ;;  %v214_v63 = vsub.f32 0.0, %v186_v57 }
 0x134   :  { %v187_v60 = vmul.f32 0.3275911, %v185_v58  ;;  %v213_v0 = vsub.f32 0.0, %v185_v58 }
 0x135   :  { %v190_v61 = vadd.f32 1.0, %v188_v59  ;;  %v216_v2 = vmul.f32 %v214_v63, %v186_v57 }
 0x136   :  { %v189_v62 = vadd.f32 1.0, %v187_v60  ;;  %v215_v4 = vmul.f32 %v213_v0, %v185_v58 }
 0x137   :  { %515 = vrcp.f32 %v190_v61  ;;  %v219_v8 = vmul.f32 1.442695, %v216_v2 }
 0x138   :  { %517 = vrcp.f32 %v189_v62  ;;  %v217_v10 = vmul.f32 1.442695, %v215_v4 }
 0x139   :  { %519 = vpow2.f32 %v219_v8 }
 0x13a   :  { %521 = vpow2.f32 %v217_v10 }
 0x141   :  { %v516_v1 = vpop.eup %515 }
 0x142   :  { %v518_v3 = vpop.eup %517  ;;  %v196_v5 = vmul.f32 1.0614054, %v516_v1 }
 0x143   :  { %v195_v6 = vmul.f32 1.0614054, %v518_v3  ;;  %v520_v24 = vpop.eup %519 }
 0x144   :  { %v198_v7 = vadd.f32 -1.4531521, %v196_v5  ;;  %v522_v26 = vpop.eup %521 }
 0x145   :  { %v197_v9 = vadd.f32 -1.4531521, %v195_v6 }
 0x146   :  { %v200_v11 = vmul.f32 %v516_v1, %v198_v7 }
 0x147   :  { %v199_v12 = vmul.f32 %v518_v3, %v197_v9 }
 0x148   :  { %v202_v13 = vadd.f32 1.4214138, %v200_v11 }
 0x149   :  { %v201_v14 = vadd.f32 1.4214138, %v199_v12 }
 0x14a   :  { %v204_v15 = vmul.f32 %v516_v1, %v202_v13 }
 0x14b   :  { %v203_v16 = vmul.f32 %v518_v3, %v201_v14 }
 0x14c   :  { %v206_v17 = vadd.f32 -0.28449672, %v204_v15 }
 0x14d   :  { %v205_v18 = vadd.f32 -0.28449672, %v203_v16 }
 0x14e   :  { %v208_v19 = vmul.f32 %v516_v1, %v206_v17 }
 0x14f   :  { %v207_v20 = vmul.f32 %v518_v3, %v205_v18 }
 0x150   :  { %v210_v21 = vadd.f32 0.2548296, %v208_v19 }
 0x151   :  { %v209_v22 = vadd.f32 0.2548296, %v207_v20 }
 0x152   :  { %v212_v23 = vmul.f32 %v516_v1, %v210_v21 }
 0x153   :  { %v211_v25 = vmul.f32 %v518_v3, %v209_v22 }
 0x154   :  { %v222_v27 = vmul.f32 %v520_v24, %v212_v23 }
 0x155   :  { %v221_v28 = vmul.f32 %v522_v26, %v211_v25 }
 0x156   :  { %v224_v29 = vsub.f32 1.0, %v222_v27 }
 0x157   :  { %v223_v30 = vsub.f32 1.0, %v221_v28 }
 0x158   :  { %v228_v31 = vsub.f32 0.0, %v224_v29 }
 0x159   :  { %v227_v32 = vsub.f32 0.0, %v223_v30 }
 0x15a   :  { %v230_v33 = vsel %vm226_vm0, %v224_v29, %v228_v31 }
 0x15b   :  { %v229_v34 = vsel %vm225_vm1, %v223_v30, %v227_v32  ;;  %v232_v35 = vadd.f32 1.0, %v230_v33 }
 0x15c   :  { %v231_v37 = vadd.f32 1.0, %v229_v34 }
 0x15d   :  { %v234_v40 = vmul.f32 %v232_v35, %v182_v38 }
 0x15e   :  { %v233_v39 = vmul.f32 %v231_v37, %v181_v36 }
 0x160   :  { %442 = vmatprep.mubr.f32.mxu1 %v233_v39 }
 0x161   :  { %443 = vmatmul.mubr.f32.vlgmr.msra.gmra.mrb[0].mxu1 %v234_v40 }
 0x234   :  { %v444_v42 = vpop.f32.mrb[0].mxu1 }
 0x235   :  { %v314_v43 = vadd.f32 %v444_v42, %v338_v41  ;;  %v308_v44 = vpop.f32.mrb[1].mxu1 }
 0x236   :  { %v309_v45 = vadd.f32 %v338_v41, %v308_v44 }
 0x237   :  { %318 = vst [vmem:[#allocation9 + $0x8] sm:$0xff] %v314_v43 }
 0x238   :  { %317 = vst [vmem:[#allocation9] sm:$0xff] %v309_v45 }
 0x239   :  { %600 = shalt.err (!%p597_p0)
}
 0x23a   :  { %s601_s4 = scalar_lea.hbm %s731_s5, 256 }
 0x23b   :  { %p602_p1 = scmp.ne.s32.totalorder %s731_s5, %s601_s4  ;;  %p605_p2 = scmp.lt.u32.totalorder %s601_s4, %s731_s5 }
 0x23d   :  { %p607_p3 = pnand %p605_p2, %p602_p1 }
 0x23f   :  { %610 = shalt.err (!%p607_p3)
}
 0x240   :  { %330 = dma.vmem_to_hbm [thread:$0]  %s325_s9, 256, %s731_s5, [#allocation5], %s619_s30, %s619_s30, %s620_s6  }
 0x241   :  { %615 = dma.done.wait [#allocation5], 256  }
 0x242   :  { %616 = vsyncadd [#allocation5], 4294967040 }
 0x243   :  { %334 = vsyncpa [#allocation4], 1 }
 0x244   :  { %335 = vsyncpa [#allocation7], 1 }
 0x245   :  { %336 = vsyncpa [#allocation5], 1 }

</bundles_post_ra>
